<compile_context>
chip_gen: v6e
topology: v6e:2x2x1
jax: 0.10.0
libtpu: 0.0.40
codegen_flags: <defaults>
</compile_context>

<pallas_src>
import functools

import jax
import jax.numpy as jnp
import numpy as np
from jax.experimental import pallas as pl
from jax.experimental.pallas import tpu as pltpu


def _merger_kernel(loc_ref, patch_ref, out_ref, *, K, Hp, Wp):
    """loc_ref: (2*N_pad,) SMEM; patch_ref: (B, K, Hp, Wp, C_t); out_ref: (B, H_pad, W_pad, C_t)."""
    n = pl.program_id(1)  # reduction ("arbitrary") axis over patch batches

    # Zero the resident padded canvas at the start of each channel tile.
    @pl.when(n == 0)
    def _():
        out_ref[...] = jnp.zeros_like(out_ref)

    base = n * K
    # K is small & static: unrolled at trace time, patch indices fully static.
    for k in range(K):
        idx = 2 * (base + k)
        h0 = loc_ref[idx]
        w0 = loc_ref[idx + 1]
        patch = patch_ref[:, k].astype(jnp.float32)  # (B, Hp, Wp, C_t)
        cur = out_ref[:, pl.ds(h0, Hp), pl.ds(w0, Wp), :]
        out_ref[:, pl.ds(h0, Hp), pl.ds(w0, Wp), :] = cur + patch


def _coverage_map(loc, H, W, Hp, Wp):
    """(H, W) float32 count of how many patches cover each pixel (clip-aware)."""
    canvas = jnp.zeros((H + Hp, W + Wp), jnp.float32)
    ones = jnp.ones((Hp, Wp), jnp.float32)

    def body(i, c):
        h0 = loc[i, 0]
        w0 = loc[i, 1]
        cur = jax.lax.dynamic_slice(c, (h0, w0), (Hp, Wp))
        return jax.lax.dynamic_update_slice(c, cur + ones, (h0, w0))

    canvas = jax.lax.fori_loop(0, loc.shape[0], body, canvas)
    return canvas[:H, :W]


def size_preserving_patch_merger(patches_nchw, locations, out_hw, patch_size,
                                 *, patches_per_step=8):
    """patches_nchw: (B, N, C, Hp, Wp); locations: (N, 2) int; out_hw: (H, W)."""
    B, N, C, Hp, Wp = patches_nchw.shape
    H, W = out_hw
    assert Hp == patch_size and Wp == patch_size
    out_dtype = patches_nchw.dtype

    if N == 0:  # PyTorch returns 0 / (0 + eps) == zeros
        return jnp.zeros((B, C, H, W), dtype=out_dtype)

    H_pad, W_pad = H + Hp, W + Wp

    # Clamp locations so every (Hp, Wp) window fits inside the padded canvas
    # (Pallas does no runtime OOB check on VMEM refs).
    loc = jnp.asarray(locations, dtype=jnp.int32).reshape(N, 2)
    loc = jnp.clip(loc, 0, jnp.array([H, W], dtype=jnp.int32))

    # Weight map depends only on locations -> precompute reciprocal outside the kernel.
    inv_w = 1.0 / (_coverage_map(loc, H, W, Hp, Wp) + 1e-8)  # (H, W)

    # Batch K patches per grid step; pad N with zero patches at (0, 0) (adds nothing).
    K = min(patches_per_step, N)
    n_steps = -(-N // K)
    pad_n = n_steps * K - N

    patches = patches_nchw
    if pad_n:
        patches = jnp.pad(patches, ((0, 0), (0, pad_n), (0, 0), (0, 0), (0, 0)))
        loc = jnp.pad(loc, ((0, pad_n), (0, 0)))
    loc_flat = loc.reshape(-1)  # (2*N_pad,) 1-D int32 for SMEM

    # NCHW -> NHWC per patch: dynamic offsets stay off the lane dim (C on lanes).
    # TODO(synk): fold this transpose into the kernel (per-tile XLU transpose) to save one HBM pass.
    patches = jnp.transpose(patches, (0, 1, 3, 4, 2))  # (B, N_pad, Hp, Wp, C)

    # Channel tiling: a leading *parallel* axis when C is lane-dense (multiple of 128),
    # sharding across TensorCores and shrinking the per-core canvas (v7x: 64 MiB VMEM).
    C_t = 128 if C % 128 == 0 else C
    n_ct = C // C_t

    # VMEM budget: resident f32 canvas + double-buffered patch block.
    itemsize = jnp.dtype(patches.dtype).itemsize
    acc_bytes = 4 * B * H_pad * W_pad * C_t
    in_bytes = 2 * B * K * Hp * Wp * C_t * itemsize
    if acc_bytes + in_bytes > 48 * 1024 * 1024:
        # TODO(synk): spatially tile the canvas (grid over H) for very large H*W*C.
        raise ValueError("Canvas accumulator exceeds safe VMEM budget; needs spatial tiling")
    vmem_limit = int(min(64 * 1024 * 1024,
                         max(32 * 1024 * 1024, 2 * (acc_bytes + in_bytes))))

    kernel = functools.partial(_merger_kernel, K=K, Hp=Hp, Wp=Wp)

    out_padded = pl.pallas_call(
        kernel,
        out_shape=jax.ShapeDtypeStruct((B, H_pad, W_pad, C), jnp.float32),
        grid_spec=pltpu.PrefetchScalarGridSpec(
            num_scalar_prefetch=1,           # flattened locations -> SMEM
            grid=(n_ct, n_steps),            # (parallel C tiles, reduction over patch batches)
            in_specs=[
                pl.BlockSpec((B, K, Hp, Wp, C_t), lambda c, n, loc: (0, n, 0, 0, c)),
            ],
            out_specs=pl.BlockSpec((B, H_pad, W_pad, C_t), lambda c, n, loc: (0, 0, 0, c)),
        ),
        compiler_params=pltpu.CompilerParams(
            dimension_semantics=("parallel", "arbitrary"),
            vmem_limit_bytes=vmem_limit,
        ),
    )(loc_flat, patches)

    # Crop the pad region, normalize with the precomputed reciprocal (multiply, not divide),
    # and return NCHW in the original dtype. XLA fuses crop * inv_w + transpose + cast.
    out = out_padded[:, :H, :W, :] * inv_w[None, :, :, None]
    return jnp.transpose(out, (0, 3, 1, 2)).astype(out_dtype)


def _reference_numpy(patches, locations, H, W, patch_size):
    """Direct transcription of the PyTorch forward."""
    B, N, C, Hp, Wp = patches.shape
    out = np.zeros((B, C, H, W), dtype=patches.dtype)
    wts = np.zeros((B, 1, H, W), dtype=patches.dtype)
    for idx, (h0, w0) in enumerate(locations):
        p = patches[:, idx]
        h1 = min(h0 + patch_size, H)
        w1 = min(w0 + patch_size, W)
        out[:, :, h0:h1, w0:w1] += p[:, :, : h1 - h0, : w1 - w0]
        wts[:, :, h0:h1, w0:w1] += 1.0
    return out / (wts + 1e-8)


if __name__ == "__main__":
    # Small synthetic config: patch_size=8, canvas 16x16, overlapping + clipped tiles.
    B, C = 2, 8
    patch_size = 8
    H, W = 16, 16
    locations = [(0, 0), (0, 8), (8, 0), (8, 8), (4, 4), (10, 10)]  # overlap + clip
    N = len(locations)

    key = jax.random.PRNGKey(0)
    patches = jax.random.normal(key, (B, N, C, patch_size, patch_size), dtype=jnp.float32)

    out = size_preserving_patch_merger(patches, locations, (H, W), patch_size)
    out = jax.block_until_ready(out)

    ref = _reference_numpy(np.asarray(patches), locations, H, W, patch_size)
    np.testing.assert_allclose(np.asarray(out), ref, rtol=1e-5, atol=1e-5)

    print("KERNEL_OK")
</pallas_src>

<mosaic_0001>
module attributes {stable_mosaic.version = 11 : i64} {
  func.func @_merger_kernel(%arg0: i32, %arg1: i32, %arg2: memref<12xi32, #tpu.memory_space<smem>>, %arg3: memref<2x6x8x8x8xf32, #tpu.memory_space<vmem>>, %arg4: memref<2x24x24x8xf32, #tpu.memory_space<vmem>>) attributes {dimension_semantics = [#tpu.dimension_semantics<parallel>, #tpu.dimension_semantics<arbitrary>], iteration_bounds = array<i64: 1, 1>, scalar_prefetch = 1 : i64, scratch_operands = 0 : i64, tpu.core_type = #tpu.core_type<tc>, window_params = [{transform_indices = @transform_0, window_bounds = array<i64: 2, 6, 8, 8, 8>}, {transform_indices = @transform_1, window_bounds = array<i64: 2, 24, 24, 8>}]} {
    %c0_i32 = arith.constant 0 : i32
    %0 = arith.cmpi eq, %arg1, %c0_i32 : i32
    %1 = arith.extui %0 : i1 to i32
    %c0_i32_0 = arith.constant 0 : i32
    %2 = arith.cmpi ne, %1, %c0_i32_0 : i32
    scf.if %2 {
      %cst = arith.constant 0.000000e+00 : f32
      %100 = vector.broadcast %cst : f32 to vector<2x24x24x8xf32>
      %c0_62 = arith.constant 0 : index
      %c0_63 = arith.constant 0 : index
      %c0_64 = arith.constant 0 : index
      %c0_65 = arith.constant 0 : index
      %101 = vector.load %arg4[%c0_62, %c0_63, %c0_64, %c0_65] : memref<2x24x24x8xf32, #tpu.memory_space<vmem>>, vector<2x24x24x8xf32>
      tpu.vector_store %arg4[%c0_62, %c0_63, %c0_64, %c0_65], %100 {strides = array<i32>} : memref<2x24x24x8xf32, #tpu.memory_space<vmem>>, vector<2x24x24x8xf32>,
    } else {
    }
    %c6_i32 = arith.constant 6 : i32
    %3 = arith.muli %arg1, %c6_i32 : i32
    %c0_i32_1 = arith.constant 0 : i32
    %4 = arith.addi %3, %c0_i32_1 : i32
    %c2_i32 = arith.constant 2 : i32
    %5 = arith.muli %c2_i32, %4 : i32
    %6 = arith.index_cast %5 : i32 to index
    %7 = memref.load %arg2[%6] : memref<12xi32, #tpu.memory_space<smem>>
    %c1_i32 = arith.constant 1 : i32
    %8 = arith.addi %5, %c1_i32 : i32
    %9 = arith.index_cast %8 : i32 to index
    %10 = memref.load %arg2[%9] : memref<12xi32, #tpu.memory_space<smem>>
    %c0 = arith.constant 0 : index
    %c0_2 = arith.constant 0 : index
    %c0_3 = arith.constant 0 : index
    %c0_4 = arith.constant 0 : index
    %c0_5 = arith.constant 0 : index
    %11 = vector.load %arg3[%c0, %c0_2, %c0_3, %c0_4, %c0_5] : memref<2x6x8x8x8xf32, #tpu.memory_space<vmem>>, vector<2x1x8x8x8xf32>
    %12 = vector.shape_cast %11 : vector<2x1x8x8x8xf32> to vector<2x8x8x8xf32>
    %c0_6 = arith.constant 0 : index
    %13 = arith.index_cast %7 : i32 to index
    %14 = arith.index_cast %10 : i32 to index
    %c0_7 = arith.constant 0 : index
    %15 = vector.load %arg4[%c0_6, %13, %14, %c0_7] : memref<2x24x24x8xf32, #tpu.memory_space<vmem>>, vector<2x8x8x8xf32>
    %16 = arith.addf %15, %12 : vector<2x8x8x8xf32>
    %c0_8 = arith.constant 0 : index
    %17 = arith.index_cast %7 : i32 to index
    %18 = arith.index_cast %10 : i32 to index
    %c0_9 = arith.constant 0 : index
    %19 = vector.load %arg4[%c0_8, %17, %18, %c0_9] : memref<2x24x24x8xf32, #tpu.memory_space<vmem>>, vector<2x8x8x8xf32>
    tpu.vector_store %arg4[%c0_8, %17, %18, %c0_9], %16 {strides = array<i32>} : memref<2x24x24x8xf32, #tpu.memory_space<vmem>>, vector<2x8x8x8xf32>,
    %c1_i32_10 = arith.constant 1 : i32
    %20 = arith.addi %3, %c1_i32_10 : i32
    %c2_i32_11 = arith.constant 2 : i32
    %21 = arith.muli %c2_i32_11, %20 : i32
    %22 = arith.index_cast %21 : i32 to index
    %23 = memref.load %arg2[%22] : memref<12xi32, #tpu.memory_space<smem>>
    %c1_i32_12 = arith.constant 1 : i32
    %24 = arith.addi %21, %c1_i32_12 : i32
    %25 = arith.index_cast %24 : i32 to index
    %26 = memref.load %arg2[%25] : memref<12xi32, #tpu.memory_space<smem>>
    %c0_13 = arith.constant 0 : index
    %c1 = arith.constant 1 : index
    %c0_14 = arith.constant 0 : index
    %c0_15 = arith.constant 0 : index
    %c0_16 = arith.constant 0 : index
    %27 = vector.load %arg3[%c0_13, %c1, %c0_14, %c0_15, %c0_16] : memref<2x6x8x8x8xf32, #tpu.memory_space<vmem>>, vector<2x1x8x8x8xf32>
    %28 = vector.shape_cast %27 : vector<2x1x8x8x8xf32> to vector<2x8x8x8xf32>
    %c0_17 = arith.constant 0 : index
    %29 = arith.index_cast %23 : i32 to index
    %30 = arith.index_cast %26 : i32 to index
    %c0_18 = arith.constant 0 : index
    %31 = vector.load %arg4[%c0_17, %29, %30, %c0_18] : memref<2x24x24x8xf32, #tpu.memory_space<vmem>>, vector<2x8x8x8xf32>
    %32 = arith.addf %31, %28 : vector<2x8x8x8xf32>
    %c0_19 = arith.constant 0 : index
    %33 = arith.index_cast %23 : i32 to index
    %34 = arith.index_cast %26 : i32 to index
    %c0_20 = arith.constant 0 : index
    %35 = vector.load %arg4[%c0_19, %33, %34, %c0_20] : memref<2x24x24x8xf32, #tpu.memory_space<vmem>>, vector<2x8x8x8xf32>
    tpu.vector_store %arg4[%c0_19, %33, %34, %c0_20], %32 {strides = array<i32>} : memref<2x24x24x8xf32, #tpu.memory_space<vmem>>, vector<2x8x8x8xf32>,
    %c2_i32_21 = arith.constant 2 : i32
    %36 = arith.addi %3, %c2_i32_21 : i32
    %c2_i32_22 = arith.constant 2 : i32
    %37 = arith.muli %c2_i32_22, %36 : i32
    %38 = arith.index_cast %37 : i32 to index
    %39 = memref.load %arg2[%38] : memref<12xi32, #tpu.memory_space<smem>>
    %c1_i32_23 = arith.constant 1 : i32
    %40 = arith.addi %37, %c1_i32_23 : i32
    %41 = arith.index_cast %40 : i32 to index
    %42 = memref.load %arg2[%41] : memref<12xi32, #tpu.memory_space<smem>>
    %c0_24 = arith.constant 0 : index
    %c2 = arith.constant 2 : index
    %c0_25 = arith.constant 0 : index
    %c0_26 = arith.constant 0 : index
    %c0_27 = arith.constant 0 : index
    %43 = vector.load %arg3[%c0_24, %c2, %c0_25, %c0_26, %c0_27] : memref<2x6x8x8x8xf32, #tpu.memory_space<vmem>>, vector<2x1x8x8x8xf32>
    %44 = vector.shape_cast %43 : vector<2x1x8x8x8xf32> to vector<2x8x8x8xf32>
    %c0_28 = arith.constant 0 : index
    %45 = arith.index_cast %39 : i32 to index
    %46 = arith.index_cast %42 : i32 to index
    %c0_29 = arith.constant 0 : index
    %47 = vector.load %arg4[%c0_28, %45, %46, %c0_29] : memref<2x24x24x8xf32, #tpu.memory_space<vmem>>, vector<2x8x8x8xf32>
    %48 = arith.addf %47, %44 : vector<2x8x8x8xf32>
    %c0_30 = arith.constant 0 : index
    %49 = arith.index_cast %39 : i32 to index
    %50 = arith.index_cast %42 : i32 to index
    %c0_31 = arith.constant 0 : index
    %51 = vector.load %arg4[%c0_30, %49, %50, %c0_31] : memref<2x24x24x8xf32, #tpu.memory_space<vmem>>, vector<2x8x8x8xf32>
    tpu.vector_store %arg4[%c0_30, %49, %50, %c0_31], %48 {strides = array<i32>} : memref<2x24x24x8xf32, #tpu.memory_space<vmem>>, vector<2x8x8x8xf32>,
    %c3_i32 = arith.constant 3 : i32
    %52 = arith.addi %3, %c3_i32 : i32
    %c2_i32_32 = arith.constant 2 : i32
    %53 = arith.muli %c2_i32_32, %52 : i32
    %54 = arith.index_cast %53 : i32 to index
    %55 = memref.load %arg2[%54] : memref<12xi32, #tpu.memory_space<smem>>
    %c1_i32_33 = arith.constant 1 : i32
    %56 = arith.addi %53, %c1_i32_33 : i32
    %57 = arith.index_cast %56 : i32 to index
    %58 = memref.load %arg2[%57] : memref<12xi32, #tpu.memory_space<smem>>
    %c0_34 = arith.constant 0 : index
    %c3 = arith.constant 3 : index
    %c0_35 = arith.constant 0 : index
    %c0_36 = arith.constant 0 : index
    %c0_37 = arith.constant 0 : index
    %59 = vector.load %arg3[%c0_34, %c3, %c0_35, %c0_36, %c0_37] : memref<2x6x8x8x8xf32, #tpu.memory_space<vmem>>, vector<2x1x8x8x8xf32>
    %60 = vector.shape_cast %59 : vector<2x1x8x8x8xf32> to vector<2x8x8x8xf32>
    %c0_38 = arith.constant 0 : index
    %61 = arith.index_cast %55 : i32 to index
    %62 = arith.index_cast %58 : i32 to index
    %c0_39 = arith.constant 0 : index
    %63 = vector.load %arg4[%c0_38, %61, %62, %c0_39] : memref<2x24x24x8xf32, #tpu.memory_space<vmem>>, vector<2x8x8x8xf32>
    %64 = arith.addf %63, %60 : vector<2x8x8x8xf32>
    %c0_40 = arith.constant 0 : index
    %65 = arith.index_cast %55 : i32 to index
    %66 = arith.index_cast %58 : i32 to index
    %c0_41 = arith.constant 0 : index
    %67 = vector.load %arg4[%c0_40, %65, %66, %c0_41] : memref<2x24x24x8xf32, #tpu.memory_space<vmem>>, vector<2x8x8x8xf32>
    tpu.vector_store %arg4[%c0_40, %65, %66, %c0_41], %64 {strides = array<i32>} : memref<2x24x24x8xf32, #tpu.memory_space<vmem>>, vector<2x8x8x8xf32>,
    %c4_i32 = arith.constant 4 : i32
    %68 = arith.addi %3, %c4_i32 : i32
    %c2_i32_42 = arith.constant 2 : i32
    %69 = arith.muli %c2_i32_42, %68 : i32
    %70 = arith.index_cast %69 : i32 to index
    %71 = memref.load %arg2[%70] : memref<12xi32, #tpu.memory_space<smem>>
    %c1_i32_43 = arith.constant 1 : i32
    %72 = arith.addi %69, %c1_i32_43 : i32
    %73 = arith.index_cast %72 : i32 to index
    %74 = memref.load %arg2[%73] : memref<12xi32, #tpu.memory_space<smem>>
    %c0_44 = arith.constant 0 : index
    %c4 = arith.constant 4 : index
    %c0_45 = arith.constant 0 : index
    %c0_46 = arith.constant 0 : index
    %c0_47 = arith.constant 0 : index
    %75 = vector.load %arg3[%c0_44, %c4, %c0_45, %c0_46, %c0_47] : memref<2x6x8x8x8xf32, #tpu.memory_space<vmem>>, vector<2x1x8x8x8xf32>
    %76 = vector.shape_cast %75 : vector<2x1x8x8x8xf32> to vector<2x8x8x8xf32>
    %c0_48 = arith.constant 0 : index
    %77 = arith.index_cast %71 : i32 to index
    %78 = arith.index_cast %74 : i32 to index
    %c0_49 = arith.constant 0 : index
    %79 = vector.load %arg4[%c0_48, %77, %78, %c0_49] : memref<2x24x24x8xf32, #tpu.memory_space<vmem>>, vector<2x8x8x8xf32>
    %80 = arith.addf %79, %76 : vector<2x8x8x8xf32>
    %c0_50 = arith.constant 0 : index
    %81 = arith.index_cast %71 : i32 to index
    %82 = arith.index_cast %74 : i32 to index
    %c0_51 = arith.constant 0 : index
    %83 = vector.load %arg4[%c0_50, %81, %82, %c0_51] : memref<2x24x24x8xf32, #tpu.memory_space<vmem>>, vector<2x8x8x8xf32>
    tpu.vector_store %arg4[%c0_50, %81, %82, %c0_51], %80 {strides = array<i32>} : memref<2x24x24x8xf32, #tpu.memory_space<vmem>>, vector<2x8x8x8xf32>,
    %c5_i32 = arith.constant 5 : i32
    %84 = arith.addi %3, %c5_i32 : i32
    %c2_i32_52 = arith.constant 2 : i32
    %85 = arith.muli %c2_i32_52, %84 : i32
    %86 = arith.index_cast %85 : i32 to index
    %87 = memref.load %arg2[%86] : memref<12xi32, #tpu.memory_space<smem>>
    %c1_i32_53 = arith.constant 1 : i32
    %88 = arith.addi %85, %c1_i32_53 : i32
    %89 = arith.index_cast %88 : i32 to index
    %90 = memref.load %arg2[%89] : memref<12xi32, #tpu.memory_space<smem>>
    %c0_54 = arith.constant 0 : index
    %c5 = arith.constant 5 : index
    %c0_55 = arith.constant 0 : index
    %c0_56 = arith.constant 0 : index
    %c0_57 = arith.constant 0 : index
    %91 = vector.load %arg3[%c0_54, %c5, %c0_55, %c0_56, %c0_57] : memref<2x6x8x8x8xf32, #tpu.memory_space<vmem>>, vector<2x1x8x8x8xf32>
    %92 = vector.shape_cast %91 : vector<2x1x8x8x8xf32> to vector<2x8x8x8xf32>
    %c0_58 = arith.constant 0 : index
    %93 = arith.index_cast %87 : i32 to index
    %94 = arith.index_cast %90 : i32 to index
    %c0_59 = arith.constant 0 : index
    %95 = vector.load %arg4[%c0_58, %93, %94, %c0_59] : memref<2x24x24x8xf32, #tpu.memory_space<vmem>>, vector<2x8x8x8xf32>
    %96 = arith.addf %95, %92 : vector<2x8x8x8xf32>
    %c0_60 = arith.constant 0 : index
    %97 = arith.index_cast %87 : i32 to index
    %98 = arith.index_cast %90 : i32 to index
    %c0_61 = arith.constant 0 : index
    %99 = vector.load %arg4[%c0_60, %97, %98, %c0_61] : memref<2x24x24x8xf32, #tpu.memory_space<vmem>>, vector<2x8x8x8xf32>
    tpu.vector_store %arg4[%c0_60, %97, %98, %c0_61], %96 {strides = array<i32>} : memref<2x24x24x8xf32, #tpu.memory_space<vmem>>, vector<2x8x8x8xf32>,
    return
  }
  func.func @transform_0(%arg0: i32, %arg1: i32, %arg2: memref<12xi32, #tpu.memory_space<smem>>) -> (i32, i32, i32, i32, i32) {
    %c0_i32 = arith.constant 0 : i32
    %c0_i32_0 = arith.constant 0 : i32
    %c0_i32_1 = arith.constant 0 : i32
    %c0_i32_2 = arith.constant 0 : i32
    return %c0_i32, %arg1, %c0_i32_0, %c0_i32_1, %arg0 : i32, i32, i32, i32, i32
  }
  func.func @transform_1(%arg0: i32, %arg1: i32, %arg2: memref<12xi32, #tpu.memory_space<smem>>) -> (i32, i32, i32, i32) {
    %c0_i32 = arith.constant 0 : i32
    %c0_i32_0 = arith.constant 0 : i32
    %c0_i32_1 = arith.constant 0 : i32
    %c0_i32_2 = arith.constant 0 : i32
    return %c0_i32, %c0_i32_0, %c0_i32_1, %arg0 : i32, i32, i32, i32
  }
}

</mosaic_0001>

<bundles_post_ra>
// kernel: tpu_custom_call.1
= control target key start
LH: loop header
LB: loop body
LE: loop exit
PB: predicated region body
PF: predicated region fallthrough
CT: control target
= control target key end

     0   :  { %s685_s9 = smov [#allocation3]   ;;  %s1779_s0 = inlined_call_operand.hbm [shape: s32[12], index: 0, kind: input, shape index: {}]   ;;  %s1780_s1 = inlined_call_operand.hbm [shape: f32[2,6,8,8,8], index: 1, kind: input, shape index: {}]   ;;  %s1781_s2 = inlined_call_operand.vmem [shape: f32[2,24,24,8], index: 2, kind: output, shape index: {}]  }
   0x1   :  { %8 = dma.hbm_to_smem %s1779_s0, 16, %s685_s9, [#allocation2] }
   0x2   :  { %681 = dma.done.wait [#allocation2], 16 }
   0x3   :  { %682 = vsyncadd [#allocation2], 4294967280 }
   0x4   :  { %10 = sfence }
   0x5   :  { %11 = vsyncpa [#allocation5], 0  ;;  %s686_s12 = smov [#allocation4]  }
   0x6   :  { %s17_s13 = sshll.u32 %s686_s12, 4  ;;  %s18_s13 = int_to_ptr.vmem [resolvable:$true] %s17_s13 }
   0x7   :  { %s669_s14 = scalar_lea.vmem %s18_s13, 12288  ;;  %p674_p1 = scmp.lt.s32.totalorder %s18_s13, %s18_s13 }
   0x8   :  { %p670_p0 = scmp.ne.s32.totalorder %s18_s13, %s669_s14  ;;  %p675_p2 = scmp.lt.s32.totalorder %s669_s14, %s669_s14 }
   0xa   :  { %p676_p3 = por %p675_p2, %p674_p1 }
   0xc   :  { %p677_p4 = pnand %p676_p3, %p670_p0 }
   0xe   :  { %680 = shalt.err (!%p677_p4)
}
   0xf   :  { %s687_s15 = smov 128   ;;  %s688_s16 = smov 8  }
  0x10   :  { %23 = dma.hbm_to_vmem [thread:$0]  %s1780_s1, 12288, %s18_s13, [#allocation5], %s687_s15, %s687_s15, %s688_s16  }
  0x11   :  { %683 = dma.done.wait [#allocation5], 12288  }
  0x12   :  { %684 = vsyncadd [#allocation5], 4294955008  ;;  %vm31_vm0 = vcmask 64512   ;;  %v689_v0 = vmov 0.0   ;;  %s178_s7 = sld [smem:[#allocation3]]  ;;  %v181_v1 = vld [vmem:[#allocation4] sm:$0xff] }
  0x13   :  { %32 = vst.msk [vmem:[%s1781_s2] sm:$0xff] %vm31_vm0, %v689_v0  ;;  %33 = vst.msk [vmem:[%s1781_s2 + $0x8] sm:$0xff] %vm31_vm0, %v689_v0  ;;  %s637_s8 = sld [smem:[#allocation3 + $0x1]]  ;;  %v182_v2 = vld [vmem:[#allocation4 + $0x8] sm:$0xff]  ;;  %v183_v3 = vld [vmem:[#allocation4 + $0x10] sm:$0xff] }
  0x14   :  { %34 = vst.msk [vmem:[%s1781_s2 + $0x10] sm:$0xff] %vm31_vm0, %v689_v0  ;;  %35 = vst.msk [vmem:[%s1781_s2 + $0x18] sm:$0xff] %vm31_vm0, %v689_v0  ;;  %v184_v4 = vld [vmem:[#allocation4 + $0x18] sm:$0xff]  ;;  %v185_v5 = vld [vmem:[#allocation4 + $0x20] sm:$0xff]  ;;  %s1431_s11 = sld [smem:[#allocation3 + $0x2]] }
  0x15   :  { %36 = vst.msk [vmem:[%s1781_s2 + $0x20] sm:$0xff] %vm31_vm0, %v689_v0  ;;  %37 = vst.msk [vmem:[%s1781_s2 + $0x28] sm:$0xff] %vm31_vm0, %v689_v0  ;;  %v186_v6 = vld [vmem:[#allocation4 + $0x28] sm:$0xff]  ;;  %v187_v7 = vld [vmem:[#allocation4 + $0x30] sm:$0xff]  ;;  %s1443_s15 = sld [smem:[#allocation3 + $0x3]] }
  0x16   :  { %38 = vst.msk [vmem:[%s1781_s2 + $0x30] sm:$0xff] %vm31_vm0, %v689_v0  ;;  %39 = vst.msk [vmem:[%s1781_s2 + $0x38] sm:$0xff] %vm31_vm0, %v689_v0  ;;  %v188_v8 = vld [vmem:[#allocation4 + $0x38] sm:$0xff]  ;;  %v189_v9 = vld [vmem:[#allocation4 + $0x180] sm:$0xff]  ;;  %s1495_s20 = sld [smem:[#allocation3 + $0x4]] }
  0x17   :  { %40 = vst.msk [vmem:[%s1781_s2 + $0x40] sm:$0xff] %vm31_vm0, %v689_v0  ;;  %41 = vst.msk [vmem:[%s1781_s2 + $0x48] sm:$0xff] %vm31_vm0, %v689_v0  ;;  %v190_v10 = vld [vmem:[#allocation4 + $0x188] sm:$0xff]  ;;  %v191_v11 = vld [vmem:[#allocation4 + $0x190] sm:$0xff]  ;;  %s1503_s21 = sld [smem:[#allocation3 + $0x5]] }
  0x18   :  { %42 = vst.msk [vmem:[%s1781_s2 + $0x50] sm:$0xff] %vm31_vm0, %v689_v0  ;;  %43 = vst.msk [vmem:[%s1781_s2 + $0x58] sm:$0xff] %vm31_vm0, %v689_v0  ;;  %s197_s9 = smul.u32 24, %s178_s7  ;;  %v192_v12 = vld [vmem:[#allocation4 + $0x198] sm:$0xff]  ;;  %v193_v13 = vld [vmem:[#allocation4 + $0x1a0] sm:$0xff]  ;;  %s1554_s26 = sld [smem:[#allocation3 + $0x6]] }
  0x19   :  { %44 = vst.msk [vmem:[%s1781_s2 + $0x60] sm:$0xff] %vm31_vm0, %v689_v0  ;;  %45 = vst.msk [vmem:[%s1781_s2 + $0x68] sm:$0xff] %vm31_vm0, %v689_v0  ;;  %v194_v14 = vld [vmem:[#allocation4 + $0x1a8] sm:$0xff]  ;;  %v195_v17 = vld [vmem:[#allocation4 + $0x1b0] sm:$0xff]  ;;  %s1562_s27 = sld [smem:[#allocation3 + $0x7]] }
  0x1a   :  { %46 = vst.msk [vmem:[%s1781_s2 + $0x70] sm:$0xff] %vm31_vm0, %v689_v0  ;;  %47 = vst.msk [vmem:[%s1781_s2 + $0x78] sm:$0xff] %vm31_vm0, %v689_v0  ;;  %s198_s10 = sadd.s32 %s637_s8, %s197_s9  ;;  %v196_v18 = vld [vmem:[#allocation4 + $0x1b8] sm:$0xff]  ;;  %s271_s16 = smul.u32 24, %s1431_s11  ;;  %v255_v49 = vld [vmem:[#allocation4 + $0x40] sm:$0xff] }
  0x1b   :  { %48 = vst.msk [vmem:[%s1781_s2 + $0x80] sm:$0xff] %vm31_vm0, %v689_v0  ;;  %49 = vst.msk [vmem:[%s1781_s2 + $0x88] sm:$0xff] %vm31_vm0, %v689_v0  ;;  %s1436_s14 = scalar_lea.vmem %s1781_s2, %s198_s10  ;;  %v256_v50 = vld [vmem:[#allocation4 + $0x48] sm:$0xff]  ;;  %v257_v51 = vld [vmem:[#allocation4 + $0x50] sm:$0xff]  ;;  %s1613_s5 = sld [smem:[#allocation3 + $0x8]] }
  0x1c   :  { %50 = vst.msk [vmem:[%s1781_s2 + $0x90] sm:$0xff] %vm31_vm0, %v689_v0  ;;  %51 = vst.msk [vmem:[%s1781_s2 + $0x98] sm:$0xff] %vm31_vm0, %v689_v0  ;;  %s272_s17 = sadd.s32 %s1443_s15, %s271_s16  ;;  %v258_v52 = vld [vmem:[#allocation4 + $0x58] sm:$0xff]  ;;  %v259_v53 = vld [vmem:[#allocation4 + $0x60] sm:$0xff]  ;;  %s344_s22 = smul.u32 24, %s1495_s20 }
  0x1d   :  { %52 = vst.msk [vmem:[%s1781_s2 + $0xa0] sm:$0xff] %vm31_vm0, %v689_v0  ;;  %53 = vst.msk [vmem:[%s1781_s2 + $0xa8] sm:$0xff] %vm31_vm0, %v689_v0  ;;  %v260_v54 = vld [vmem:[#allocation4 + $0x68] sm:$0xff]  ;;  %s1493_s19 = scalar_lea.vmem %s1781_s2, %s272_s17  ;;  %v261_v55 = vld [vmem:[#allocation4 + $0x70] sm:$0xff]  ;;  %s1621_s6 = sld [smem:[#allocation3 + $0x9]] }
  0x1e   :  { %54 = vst.msk [vmem:[%s1781_s2 + $0xb0] sm:$0xff] %vm31_vm0, %v689_v0  ;;  %55 = vst.msk [vmem:[%s1781_s2 + $0xb8] sm:$0xff] %vm31_vm0, %v689_v0  ;;  %v262_v56 = vld [vmem:[#allocation4 + $0x78] sm:$0xff]  ;;  %v263_v57 = vld [vmem:[#allocation4 + $0x1c0] sm:$0xff]  ;;  %s345_s1 = sadd.s32 %s1503_s21, %s344_s22  ;;  %s417_s28 = smul.u32 24, %s1554_s26 }
  0x1f   :  { %56 = vst.msk [vmem:[%s1781_s2 + $0xc0] sm:$0xff] %vm31_vm0, %v689_v0  ;;  %57 = vst.msk [vmem:[%s1781_s2 + $0xc8] sm:$0xff] %vm31_vm0, %v689_v0  ;;  %v264_v58 = vld [vmem:[#allocation4 + $0x1c8] sm:$0xff]  ;;  %v265_v59 = vld [vmem:[#allocation4 + $0x1d0] sm:$0xff]  ;;  %s1552_s25 = scalar_lea.vmem %s1781_s2, %s345_s1  ;;  %s1672_s12 = sld [smem:[#allocation3 + $0xa]] }
  0x20   :  { %58 = vst.msk [vmem:[%s1781_s2 + $0xd0] sm:$0xff] %vm31_vm0, %v689_v0  ;;  %59 = vst.msk [vmem:[%s1781_s2 + $0xd8] sm:$0xff] %vm31_vm0, %v689_v0  ;;  %v266_v60 = vld [vmem:[#allocation4 + $0x1d8] sm:$0xff]  ;;  %v267_v61 = vld [vmem:[#allocation4 + $0x1e0] sm:$0xff]  ;;  %s418_s29 = sadd.s32 %s1562_s27, %s417_s28  ;;  %s1680_s13 = sld [smem:[#allocation3 + $0xb]] }
  0x21   :  { %60 = vst.msk [vmem:[%s1781_s2 + $0xe0] sm:$0xff] %vm31_vm0, %v689_v0  ;;  %61 = vst.msk [vmem:[%s1781_s2 + $0xe8] sm:$0xff] %vm31_vm0, %v689_v0  ;;  %v268_v62 = vld [vmem:[#allocation4 + $0x1e8] sm:$0xff]  ;;  %v269_v63 = vld [vmem:[#allocation4 + $0x1f0] sm:$0xff]  ;;  %s1611_s4 = scalar_lea.vmem %s1781_s2, %s418_s29  ;;  %s490_s7 = smul.u32 24, %s1613_s5 }
  0x22   :  { %62 = vst.msk [vmem:[%s1781_s2 + $0xf0] sm:$0xff] %vm31_vm0, %v689_v0  ;;  %63 = vst.msk [vmem:[%s1781_s2 + $0xf8] sm:$0xff] %vm31_vm0, %v689_v0 }
  0x23   :  { %64 = vst.msk [vmem:[%s1781_s2 + $0x100] sm:$0xff] %vm31_vm0, %v689_v0  ;;  %65 = vst.msk [vmem:[%s1781_s2 + $0x108] sm:$0xff] %vm31_vm0, %v689_v0  ;;  %s491_s8 = sadd.s32 %s1621_s6, %s490_s7 }
  0x24   :  { %66 = vst.msk [vmem:[%s1781_s2 + $0x110] sm:$0xff] %vm31_vm0, %v689_v0  ;;  %67 = vst.msk [vmem:[%s1781_s2 + $0x118] sm:$0xff] %vm31_vm0, %v689_v0  ;;  %s1670_s11 = scalar_lea.vmem %s1781_s2, %s491_s8 }
  0x25   :  { %68 = vst.msk [vmem:[%s1781_s2 + $0x120] sm:$0xff] %vm31_vm0, %v689_v0  ;;  %69 = vst.msk [vmem:[%s1781_s2 + $0x128] sm:$0xff] %vm31_vm0, %v689_v0 }
  0x26   :  { %70 = vst.msk [vmem:[%s1781_s2 + $0x130] sm:$0xff] %vm31_vm0, %v689_v0  ;;  %71 = vst.msk [vmem:[%s1781_s2 + $0x138] sm:$0xff] %vm31_vm0, %v689_v0 }
  0x27   :  { %72 = vst.msk [vmem:[%s1781_s2 + $0x140] sm:$0xff] %vm31_vm0, %v689_v0  ;;  %73 = vst.msk [vmem:[%s1781_s2 + $0x148] sm:$0xff] %vm31_vm0, %v689_v0 }
  0x28   :  { %74 = vst.msk [vmem:[%s1781_s2 + $0x150] sm:$0xff] %vm31_vm0, %v689_v0  ;;  %75 = vst.msk [vmem:[%s1781_s2 + $0x158] sm:$0xff] %vm31_vm0, %v689_v0 }
  0x29   :  { %76 = vst.msk [vmem:[%s1781_s2 + $0x160] sm:$0xff] %vm31_vm0, %v689_v0  ;;  %77 = vst.msk [vmem:[%s1781_s2 + $0x168] sm:$0xff] %vm31_vm0, %v689_v0 }
  0x2a   :  { %78 = vst.msk [vmem:[%s1781_s2 + $0x170] sm:$0xff] %vm31_vm0, %v689_v0  ;;  %79 = vst.msk [vmem:[%s1781_s2 + $0x178] sm:$0xff] %vm31_vm0, %v689_v0 }
  0x2b   :  { %80 = vst.msk [vmem:[%s1781_s2 + $0x180] sm:$0xff] %vm31_vm0, %v689_v0  ;;  %81 = vst.msk [vmem:[%s1781_s2 + $0x188] sm:$0xff] %vm31_vm0, %v689_v0 }
  0x2c   :  { %82 = vst.msk [vmem:[%s1781_s2 + $0x190] sm:$0xff] %vm31_vm0, %v689_v0  ;;  %83 = vst.msk [vmem:[%s1781_s2 + $0x198] sm:$0xff] %vm31_vm0, %v689_v0 }
  0x2d   :  { %84 = vst.msk [vmem:[%s1781_s2 + $0x1a0] sm:$0xff] %vm31_vm0, %v689_v0  ;;  %85 = vst.msk [vmem:[%s1781_s2 + $0x1a8] sm:$0xff] %vm31_vm0, %v689_v0 }
  0x2e   :  { %86 = vst.msk [vmem:[%s1781_s2 + $0x1b0] sm:$0xff] %vm31_vm0, %v689_v0  ;;  %87 = vst.msk [vmem:[%s1781_s2 + $0x1b8] sm:$0xff] %vm31_vm0, %v689_v0 }
  0x2f   :  { %88 = vst.msk [vmem:[%s1781_s2 + $0x1c0] sm:$0xff] %vm31_vm0, %v689_v0  ;;  %89 = vst.msk [vmem:[%s1781_s2 + $0x1c8] sm:$0xff] %vm31_vm0, %v689_v0 }
  0x30   :  { %90 = vst.msk [vmem:[%s1781_s2 + $0x1d0] sm:$0xff] %vm31_vm0, %v689_v0  ;;  %91 = vst.msk [vmem:[%s1781_s2 + $0x1d8] sm:$0xff] %vm31_vm0, %v689_v0 }
  0x31   :  { %92 = vst.msk [vmem:[%s1781_s2 + $0x1e0] sm:$0xff] %vm31_vm0, %v689_v0  ;;  %93 = vst.msk [vmem:[%s1781_s2 + $0x1e8] sm:$0xff] %vm31_vm0, %v689_v0 }
  0x32   :  { %94 = vst.msk [vmem:[%s1781_s2 + $0x1f0] sm:$0xff] %vm31_vm0, %v689_v0  ;;  %95 = vst.msk [vmem:[%s1781_s2 + $0x1f8] sm:$0xff] %vm31_vm0, %v689_v0 }
  0x33   :  { %96 = vst.msk [vmem:[%s1781_s2 + $0x200] sm:$0xff] %vm31_vm0, %v689_v0  ;;  %97 = vst.msk [vmem:[%s1781_s2 + $0x208] sm:$0xff] %vm31_vm0, %v689_v0 }
  0x34   :  { %98 = vst.msk [vmem:[%s1781_s2 + $0x210] sm:$0xff] %vm31_vm0, %v689_v0  ;;  %99 = vst.msk [vmem:[%s1781_s2 + $0x218] sm:$0xff] %vm31_vm0, %v689_v0 }
  0x35   :  { %100 = vst.msk [vmem:[%s1781_s2 + $0x220] sm:$0xff] %vm31_vm0, %v689_v0  ;;  %101 = vst.msk [vmem:[%s1781_s2 + $0x228] sm:$0xff] %vm31_vm0, %v689_v0 }
  0x36   :  { %102 = vst.msk [vmem:[%s1781_s2 + $0x230] sm:$0xff] %vm31_vm0, %v689_v0  ;;  %103 = vst.msk [vmem:[%s1781_s2 + $0x238] sm:$0xff] %vm31_vm0, %v689_v0 }
  0x37   :  { %104 = vst.msk [vmem:[%s1781_s2 + $0x240] sm:$0xff] %vm31_vm0, %v689_v0  ;;  %105 = vst.msk [vmem:[%s1781_s2 + $0x248] sm:$0xff] %vm31_vm0, %v689_v0 }
  0x38   :  { %106 = vst.msk [vmem:[%s1781_s2 + $0x250] sm:$0xff] %vm31_vm0, %v689_v0  ;;  %107 = vst.msk [vmem:[%s1781_s2 + $0x258] sm:$0xff] %vm31_vm0, %v689_v0 }
  0x39   :  { %108 = vst.msk [vmem:[%s1781_s2 + $0x260] sm:$0xff] %vm31_vm0, %v689_v0  ;;  %109 = vst.msk [vmem:[%s1781_s2 + $0x268] sm:$0xff] %vm31_vm0, %v689_v0 }
  0x3a   :  { %110 = vst.msk [vmem:[%s1781_s2 + $0x270] sm:$0xff] %vm31_vm0, %v689_v0  ;;  %111 = vst.msk [vmem:[%s1781_s2 + $0x278] sm:$0xff] %vm31_vm0, %v689_v0 }
  0x3b   :  { %112 = vst.msk [vmem:[%s1781_s2 + $0x280] sm:$0xff] %vm31_vm0, %v689_v0  ;;  %113 = vst.msk [vmem:[%s1781_s2 + $0x288] sm:$0xff] %vm31_vm0, %v689_v0 }
  0x3c   :  { %114 = vst.msk [vmem:[%s1781_s2 + $0x290] sm:$0xff] %vm31_vm0, %v689_v0  ;;  %115 = vst.msk [vmem:[%s1781_s2 + $0x298] sm:$0xff] %vm31_vm0, %v689_v0 }
  0x3d   :  { %116 = vst.msk [vmem:[%s1781_s2 + $0x2a0] sm:$0xff] %vm31_vm0, %v689_v0  ;;  %117 = vst.msk [vmem:[%s1781_s2 + $0x2a8] sm:$0xff] %vm31_vm0, %v689_v0 }
  0x3e   :  { %118 = vst.msk [vmem:[%s1781_s2 + $0x2b0] sm:$0xff] %vm31_vm0, %v689_v0  ;;  %119 = vst.msk [vmem:[%s1781_s2 + $0x2b8] sm:$0xff] %vm31_vm0, %v689_v0 }
  0x3f   :  { %120 = vst.msk [vmem:[%s1781_s2 + $0x2c0] sm:$0xff] %vm31_vm0, %v689_v0  ;;  %121 = vst.msk [vmem:[%s1781_s2 + $0x2c8] sm:$0xff] %vm31_vm0, %v689_v0 }
  0x40   :  { %122 = vst.msk [vmem:[%s1781_s2 + $0x2d0] sm:$0xff] %vm31_vm0, %v689_v0  ;;  %123 = vst.msk [vmem:[%s1781_s2 + $0x2d8] sm:$0xff] %vm31_vm0, %v689_v0 }
  0x41   :  { %124 = vst.msk [vmem:[%s1781_s2 + $0x2e0] sm:$0xff] %vm31_vm0, %v689_v0  ;;  %125 = vst.msk [vmem:[%s1781_s2 + $0x2e8] sm:$0xff] %vm31_vm0, %v689_v0 }
  0x42   :  { %126 = vst.msk [vmem:[%s1781_s2 + $0x2f0] sm:$0xff] %vm31_vm0, %v689_v0  ;;  %127 = vst.msk [vmem:[%s1781_s2 + $0x2f8] sm:$0xff] %vm31_vm0, %v689_v0 }
  0x43   :  { %128 = vst.msk [vmem:[%s1781_s2 + $0x300] sm:$0xff] %vm31_vm0, %v689_v0  ;;  %129 = vst.msk [vmem:[%s1781_s2 + $0x308] sm:$0xff] %vm31_vm0, %v689_v0 }
  0x44   :  { %130 = vst.msk [vmem:[%s1781_s2 + $0x310] sm:$0xff] %vm31_vm0, %v689_v0  ;;  %131 = vst.msk [vmem:[%s1781_s2 + $0x318] sm:$0xff] %vm31_vm0, %v689_v0 }
  0x45   :  { %132 = vst.msk [vmem:[%s1781_s2 + $0x320] sm:$0xff] %vm31_vm0, %v689_v0  ;;  %133 = vst.msk [vmem:[%s1781_s2 + $0x328] sm:$0xff] %vm31_vm0, %v689_v0 }
  0x46   :  { %134 = vst.msk [vmem:[%s1781_s2 + $0x330] sm:$0xff] %vm31_vm0, %v689_v0  ;;  %135 = vst.msk [vmem:[%s1781_s2 + $0x338] sm:$0xff] %vm31_vm0, %v689_v0 }
  0x47   :  { %136 = vst.msk [vmem:[%s1781_s2 + $0x340] sm:$0xff] %vm31_vm0, %v689_v0  ;;  %137 = vst.msk [vmem:[%s1781_s2 + $0x348] sm:$0xff] %vm31_vm0, %v689_v0 }
  0x48   :  { %138 = vst.msk [vmem:[%s1781_s2 + $0x350] sm:$0xff] %vm31_vm0, %v689_v0  ;;  %139 = vst.msk [vmem:[%s1781_s2 + $0x358] sm:$0xff] %vm31_vm0, %v689_v0 }
  0x49   :  { %140 = vst.msk [vmem:[%s1781_s2 + $0x360] sm:$0xff] %vm31_vm0, %v689_v0  ;;  %141 = vst.msk [vmem:[%s1781_s2 + $0x368] sm:$0xff] %vm31_vm0, %v689_v0 }
  0x4a   :  { %142 = vst.msk [vmem:[%s1781_s2 + $0x370] sm:$0xff] %vm31_vm0, %v689_v0  ;;  %143 = vst.msk [vmem:[%s1781_s2 + $0x378] sm:$0xff] %vm31_vm0, %v689_v0 }
  0x4b   :  { %144 = vst.msk [vmem:[%s1781_s2 + $0x380] sm:$0xff] %vm31_vm0, %v689_v0  ;;  %145 = vst.msk [vmem:[%s1781_s2 + $0x388] sm:$0xff] %vm31_vm0, %v689_v0 }
  0x4c   :  { %146 = vst.msk [vmem:[%s1781_s2 + $0x390] sm:$0xff] %vm31_vm0, %v689_v0  ;;  %147 = vst.msk [vmem:[%s1781_s2 + $0x398] sm:$0xff] %vm31_vm0, %v689_v0 }
  0x4d   :  { %148 = vst.msk [vmem:[%s1781_s2 + $0x3a0] sm:$0xff] %vm31_vm0, %v689_v0  ;;  %149 = vst.msk [vmem:[%s1781_s2 + $0x3a8] sm:$0xff] %vm31_vm0, %v689_v0 }
  0x4e   :  { %150 = vst.msk [vmem:[%s1781_s2 + $0x3b0] sm:$0xff] %vm31_vm0, %v689_v0  ;;  %151 = vst.msk [vmem:[%s1781_s2 + $0x3b8] sm:$0xff] %vm31_vm0, %v689_v0 }
  0x4f   :  { %152 = vst.msk [vmem:[%s1781_s2 + $0x3c0] sm:$0xff] %vm31_vm0, %v689_v0  ;;  %153 = vst.msk [vmem:[%s1781_s2 + $0x3c8] sm:$0xff] %vm31_vm0, %v689_v0 }
  0x50   :  { %154 = vst.msk [vmem:[%s1781_s2 + $0x3d0] sm:$0xff] %vm31_vm0, %v689_v0  ;;  %155 = vst.msk [vmem:[%s1781_s2 + $0x3d8] sm:$0xff] %vm31_vm0, %v689_v0 }
  0x51   :  { %156 = vst.msk [vmem:[%s1781_s2 + $0x3e0] sm:$0xff] %vm31_vm0, %v689_v0  ;;  %157 = vst.msk [vmem:[%s1781_s2 + $0x3e8] sm:$0xff] %vm31_vm0, %v689_v0 }
  0x52   :  { %158 = vst.msk [vmem:[%s1781_s2 + $0x3f0] sm:$0xff] %vm31_vm0, %v689_v0  ;;  %159 = vst.msk [vmem:[%s1781_s2 + $0x3f8] sm:$0xff] %vm31_vm0, %v689_v0 }
  0x53   :  { %160 = vst.msk [vmem:[%s1781_s2 + $0x400] sm:$0xff] %vm31_vm0, %v689_v0  ;;  %161 = vst.msk [vmem:[%s1781_s2 + $0x408] sm:$0xff] %vm31_vm0, %v689_v0 }
  0x54   :  { %162 = vst.msk [vmem:[%s1781_s2 + $0x410] sm:$0xff] %vm31_vm0, %v689_v0  ;;  %163 = vst.msk [vmem:[%s1781_s2 + $0x418] sm:$0xff] %vm31_vm0, %v689_v0 }
  0x55   :  { %164 = vst.msk [vmem:[%s1781_s2 + $0x420] sm:$0xff] %vm31_vm0, %v689_v0  ;;  %165 = vst.msk [vmem:[%s1781_s2 + $0x428] sm:$0xff] %vm31_vm0, %v689_v0 }
  0x56   :  { %166 = vst.msk [vmem:[%s1781_s2 + $0x430] sm:$0xff] %vm31_vm0, %v689_v0  ;;  %167 = vst.msk [vmem:[%s1781_s2 + $0x438] sm:$0xff] %vm31_vm0, %v689_v0 }
  0x57   :  { %168 = vst.msk [vmem:[%s1781_s2 + $0x440] sm:$0xff] %vm31_vm0, %v689_v0  ;;  %169 = vst.msk [vmem:[%s1781_s2 + $0x448] sm:$0xff] %vm31_vm0, %v689_v0 }
  0x58   :  { %170 = vst.msk [vmem:[%s1781_s2 + $0x450] sm:$0xff] %vm31_vm0, %v689_v0  ;;  %171 = vst.msk [vmem:[%s1781_s2 + $0x458] sm:$0xff] %vm31_vm0, %v689_v0 }
  0x59   :  { %172 = vst.msk [vmem:[%s1781_s2 + $0x460] sm:$0xff] %vm31_vm0, %v689_v0  ;;  %173 = vst.msk [vmem:[%s1781_s2 + $0x468] sm:$0xff] %vm31_vm0, %v689_v0 }
  0x5a   :  { %174 = vst.msk [vmem:[%s1781_s2 + $0x470] sm:$0xff] %vm31_vm0, %v689_v0  ;;  %175 = vst.msk [vmem:[%s1781_s2 + $0x478] sm:$0xff] %vm31_vm0, %v689_v0 }
  0x61   :  { %v200_v15 = vld [vmem:[%s1436_s14] sm:$0xff]  ;;  %v201_v16 = vld [vmem:[%s1436_s14 + $0x18] sm:$0xff]  ;;  %v202_v19 = vld [vmem:[%s1436_s14 + $0x30] sm:$0xff] }
  0x62   :  { %v203_v20 = vld [vmem:[%s1436_s14 + $0x48] sm:$0xff]  ;;  %v204_v21 = vld [vmem:[%s1436_s14 + $0x60] sm:$0xff]  ;;  %v216_v22 = vadd.f32 %v200_v15, %v181_v1  ;;  %v217_v23 = vadd.f32 %v201_v16, %v182_v2  ;;  %v205_v24 = vld [vmem:[%s1436_s14 + $0x78] sm:$0xff]  ;;  %v218_v27 = vadd.f32 %v202_v19, %v183_v3 }
  0x63   :  { %v206_v25 = vld [vmem:[%s1436_s14 + $0x90] sm:$0xff]  ;;  %v207_v26 = vld [vmem:[%s1436_s14 + $0xa8] sm:$0xff]  ;;  %v219_v28 = vadd.f32 %v203_v20, %v184_v4  ;;  %v220_v29 = vadd.f32 %v204_v21, %v185_v5  ;;  %v208_v30 = vld [vmem:[%s1436_s14 + $0x240] sm:$0xff]  ;;  %v221_v33 = vadd.f32 %v205_v24, %v186_v6 }
  0x64   :  { %v209_v31 = vld [vmem:[%s1436_s14 + $0x258] sm:$0xff]  ;;  %v210_v32 = vld [vmem:[%s1436_s14 + $0x270] sm:$0xff]  ;;  %v222_v34 = vadd.f32 %v206_v25, %v187_v7  ;;  %v223_v35 = vadd.f32 %v207_v26, %v188_v8  ;;  %233 = vst.msk [vmem:[%s1436_s14] sm:$0xff] %vm31_vm0, %v216_v22  ;;  %234 = vst.msk [vmem:[%s1436_s14 + $0x18] sm:$0xff] %vm31_vm0, %v217_v23  ;;  %v224_v39 = vadd.f32 %v208_v30, %v189_v9 }
  0x65   :  { %v211_v36 = vld [vmem:[%s1436_s14 + $0x288] sm:$0xff]  ;;  %v212_v37 = vld [vmem:[%s1436_s14 + $0x2a0] sm:$0xff]  ;;  %v213_v38 = vld [vmem:[%s1436_s14 + $0x2b8] sm:$0xff]  ;;  %v225_v40 = vadd.f32 %v209_v31, %v190_v10  ;;  %v226_v41 = vadd.f32 %v210_v32, %v191_v11  ;;  %235 = vst.msk [vmem:[%s1436_s14 + $0x30] sm:$0xff] %vm31_vm0, %v218_v27 }
  0x66   :  { %236 = vst.msk [vmem:[%s1436_s14 + $0x48] sm:$0xff] %vm31_vm0, %v219_v28  ;;  %237 = vst.msk [vmem:[%s1436_s14 + $0x60] sm:$0xff] %vm31_vm0, %v220_v29  ;;  %v214_v42 = vld [vmem:[%s1436_s14 + $0x2d0] sm:$0xff]  ;;  %v215_v43 = vld [vmem:[%s1436_s14 + $0x2e8] sm:$0xff]  ;;  %v227_v44 = vadd.f32 %v211_v36, %v192_v12  ;;  %v228_v45 = vadd.f32 %v212_v37, %v193_v13  ;;  %v229_v46 = vadd.f32 %v213_v38, %v194_v14 }
  0x67   :  { %238 = vst.msk [vmem:[%s1436_s14 + $0x78] sm:$0xff] %vm31_vm0, %v221_v33  ;;  %239 = vst.msk [vmem:[%s1436_s14 + $0x90] sm:$0xff] %vm31_vm0, %v222_v34  ;;  %v230_v47 = vadd.f32 %v214_v42, %v195_v17  ;;  %v231_v48 = vadd.f32 %v215_v43, %v196_v18  ;;  %v270_v3 = vld [vmem:[#allocation4 + $0x1f8] sm:$0xff]  ;;  %v328_v33 = vld [vmem:[#allocation4 + $0x80] sm:$0xff] }
  0x68   :  { %240 = vst.msk [vmem:[%s1436_s14 + $0xa8] sm:$0xff] %vm31_vm0, %v223_v35  ;;  %241 = vst.msk [vmem:[%s1436_s14 + $0x240] sm:$0xff] %vm31_vm0, %v224_v39  ;;  %v329_v34 = vld [vmem:[#allocation4 + $0x88] sm:$0xff]  ;;  %v330_v35 = vld [vmem:[#allocation4 + $0x90] sm:$0xff] }
  0x69   :  { %242 = vst.msk [vmem:[%s1436_s14 + $0x258] sm:$0xff] %vm31_vm0, %v225_v40  ;;  %243 = vst.msk [vmem:[%s1436_s14 + $0x270] sm:$0xff] %vm31_vm0, %v226_v41  ;;  %v331_v36 = vld [vmem:[#allocation4 + $0x98] sm:$0xff]  ;;  %v332_v37 = vld [vmem:[#allocation4 + $0xa0] sm:$0xff] }
  0x6a   :  { %244 = vst.msk [vmem:[%s1436_s14 + $0x288] sm:$0xff] %vm31_vm0, %v227_v44  ;;  %245 = vst.msk [vmem:[%s1436_s14 + $0x2a0] sm:$0xff] %vm31_vm0, %v228_v45  ;;  %v333_v38 = vld [vmem:[#allocation4 + $0xa8] sm:$0xff]  ;;  %v334_v39 = vld [vmem:[#allocation4 + $0xb0] sm:$0xff] }
  0x6b   :  { %246 = vst.msk [vmem:[%s1436_s14 + $0x2b8] sm:$0xff] %vm31_vm0, %v229_v46  ;;  %247 = vst.msk [vmem:[%s1436_s14 + $0x2d0] sm:$0xff] %vm31_vm0, %v230_v47  ;;  %v335_v40 = vld [vmem:[#allocation4 + $0xb8] sm:$0xff]  ;;  %v336_v41 = vld [vmem:[#allocation4 + $0x200] sm:$0xff] }
  0x6c   :  { %248 = vst.msk [vmem:[%s1436_s14 + $0x2e8] sm:$0xff] %vm31_vm0, %v231_v48  ;;  %v337_v42 = vld [vmem:[#allocation4 + $0x208] sm:$0xff]  ;;  %v338_v43 = vld [vmem:[#allocation4 + $0x210] sm:$0xff]  ;;  %v339_v44 = vld [vmem:[#allocation4 + $0x218] sm:$0xff]  ;;  %s563_s14 = smul.u32 24, %s1672_s12 }
  0x6d   :  { %v340_v45 = vld [vmem:[#allocation4 + $0x220] sm:$0xff]  ;;  %v341_v46 = vld [vmem:[#allocation4 + $0x228] sm:$0xff]  ;;  %v342_v47 = vld [vmem:[#allocation4 + $0x230] sm:$0xff] }
  0x6e   :  { %s564_s15 = sadd.s32 %s1680_s13, %s563_s14 }
  0x6f   :  { %s1729_s18 = scalar_lea.vmem %s1781_s2, %s564_s15 }
  0x73   :  { %v274_v0 = vld [vmem:[%s1493_s19] sm:$0xff]  ;;  %v275_v1 = vld [vmem:[%s1493_s19 + $0x18] sm:$0xff]  ;;  %v276_v2 = vld [vmem:[%s1493_s19 + $0x30] sm:$0xff] }
  0x74   :  { %v277_v4 = vld [vmem:[%s1493_s19 + $0x48] sm:$0xff]  ;;  %v278_v5 = vld [vmem:[%s1493_s19 + $0x60] sm:$0xff]  ;;  %v279_v6 = vld [vmem:[%s1493_s19 + $0x78] sm:$0xff]  ;;  %v290_v7 = vadd.f32 %v274_v0, %v255_v49  ;;  %v291_v8 = vadd.f32 %v275_v1, %v256_v50  ;;  %v292_v9 = vadd.f32 %v276_v2, %v257_v51 }
  0x75   :  { %v280_v10 = vld [vmem:[%s1493_s19 + $0x90] sm:$0xff]  ;;  %v281_v11 = vld [vmem:[%s1493_s19 + $0xa8] sm:$0xff]  ;;  %v282_v12 = vld [vmem:[%s1493_s19 + $0x240] sm:$0xff]  ;;  %v293_v13 = vadd.f32 %v277_v4, %v258_v52  ;;  %v294_v14 = vadd.f32 %v278_v5, %v259_v53  ;;  %v295_v15 = vadd.f32 %v279_v6, %v260_v54 }
  0x76   :  { %v283_v16 = vld [vmem:[%s1493_s19 + $0x258] sm:$0xff]  ;;  %v284_v17 = vld [vmem:[%s1493_s19 + $0x270] sm:$0xff]  ;;  %v285_v18 = vld [vmem:[%s1493_s19 + $0x288] sm:$0xff]  ;;  %v296_v19 = vadd.f32 %v280_v10, %v261_v55  ;;  %v297_v20 = vadd.f32 %v281_v11, %v262_v56  ;;  %v298_v21 = vadd.f32 %v282_v12, %v263_v57  ;;  %306 = vst.msk [vmem:[%s1493_s19] sm:$0xff] %vm31_vm0, %v290_v7 }
  0x77   :  { %307 = vst.msk [vmem:[%s1493_s19 + $0x18] sm:$0xff] %vm31_vm0, %v291_v8  ;;  %308 = vst.msk [vmem:[%s1493_s19 + $0x30] sm:$0xff] %vm31_vm0, %v292_v9  ;;  %v286_v22 = vld [vmem:[%s1493_s19 + $0x2a0] sm:$0xff]  ;;  %v287_v23 = vld [vmem:[%s1493_s19 + $0x2b8] sm:$0xff]  ;;  %v299_v25 = vadd.f32 %v283_v16, %v264_v58  ;;  %v300_v26 = vadd.f32 %v284_v17, %v265_v59  ;;  %v301_v27 = vadd.f32 %v285_v18, %v266_v60 }
  0x78   :  { %v288_v24 = vld [vmem:[%s1493_s19 + $0x2d0] sm:$0xff]  ;;  %309 = vst.msk [vmem:[%s1493_s19 + $0x48] sm:$0xff] %vm31_vm0, %v293_v13  ;;  %310 = vst.msk [vmem:[%s1493_s19 + $0x60] sm:$0xff] %vm31_vm0, %v294_v14  ;;  %v289_v28 = vld [vmem:[%s1493_s19 + $0x2e8] sm:$0xff]  ;;  %v302_v29 = vadd.f32 %v286_v22, %v267_v61  ;;  %v303_v30 = vadd.f32 %v287_v23, %v268_v62 }
  0x79   :  { %311 = vst.msk [vmem:[%s1493_s19 + $0x78] sm:$0xff] %vm31_vm0, %v295_v15  ;;  %v304_v31 = vadd.f32 %v288_v24, %v269_v63  ;;  %312 = vst.msk [vmem:[%s1493_s19 + $0x90] sm:$0xff] %vm31_vm0, %v296_v19  ;;  %v305_v32 = vadd.f32 %v289_v28, %v270_v3  ;;  %v343_v51 = vld [vmem:[#allocation4 + $0x238] sm:$0xff]  ;;  %v401_v17 = vld [vmem:[#allocation4 + $0xc0] sm:$0xff] }
  0x7a   :  { %313 = vst.msk [vmem:[%s1493_s19 + $0xa8] sm:$0xff] %vm31_vm0, %v297_v20  ;;  %314 = vst.msk [vmem:[%s1493_s19 + $0x240] sm:$0xff] %vm31_vm0, %v298_v21  ;;  %v402_v18 = vld [vmem:[#allocation4 + $0xc8] sm:$0xff]  ;;  %v403_v19 = vld [vmem:[#allocation4 + $0xd0] sm:$0xff] }
  0x7b   :  { %315 = vst.msk [vmem:[%s1493_s19 + $0x258] sm:$0xff] %vm31_vm0, %v299_v25  ;;  %316 = vst.msk [vmem:[%s1493_s19 + $0x270] sm:$0xff] %vm31_vm0, %v300_v26  ;;  %v404_v20 = vld [vmem:[#allocation4 + $0xd8] sm:$0xff]  ;;  %v405_v21 = vld [vmem:[#allocation4 + $0xe0] sm:$0xff] }
  0x7c   :  { %317 = vst.msk [vmem:[%s1493_s19 + $0x288] sm:$0xff] %vm31_vm0, %v301_v27  ;;  %318 = vst.msk [vmem:[%s1493_s19 + $0x2a0] sm:$0xff] %vm31_vm0, %v302_v29  ;;  %v406_v22 = vld [vmem:[#allocation4 + $0xe8] sm:$0xff]  ;;  %v407_v23 = vld [vmem:[#allocation4 + $0xf0] sm:$0xff] }
  0x7d   :  { %319 = vst.msk [vmem:[%s1493_s19 + $0x2b8] sm:$0xff] %vm31_vm0, %v303_v30  ;;  %320 = vst.msk [vmem:[%s1493_s19 + $0x2d0] sm:$0xff] %vm31_vm0, %v304_v31  ;;  %v408_v24 = vld [vmem:[#allocation4 + $0xf8] sm:$0xff]  ;;  %v409_v25 = vld [vmem:[#allocation4 + $0x240] sm:$0xff] }
  0x7e   :  { %321 = vst.msk [vmem:[%s1493_s19 + $0x2e8] sm:$0xff] %vm31_vm0, %v305_v32  ;;  %v410_v26 = vld [vmem:[#allocation4 + $0x248] sm:$0xff]  ;;  %v411_v27 = vld [vmem:[#allocation4 + $0x250] sm:$0xff]  ;;  %v412_v28 = vld [vmem:[#allocation4 + $0x258] sm:$0xff] }
  0x7f   :  { %v413_v29 = vld [vmem:[#allocation4 + $0x260] sm:$0xff]  ;;  %v414_v30 = vld [vmem:[#allocation4 + $0x268] sm:$0xff]  ;;  %v415_v31 = vld [vmem:[#allocation4 + $0x270] sm:$0xff] }
  0x85   :  { %v347_v48 = vld [vmem:[%s1552_s25] sm:$0xff]  ;;  %v348_v49 = vld [vmem:[%s1552_s25 + $0x18] sm:$0xff]  ;;  %v349_v50 = vld [vmem:[%s1552_s25 + $0x30] sm:$0xff] }
  0x86   :  { %v350_v52 = vld [vmem:[%s1552_s25 + $0x48] sm:$0xff]  ;;  %v351_v53 = vld [vmem:[%s1552_s25 + $0x60] sm:$0xff]  ;;  %v352_v54 = vld [vmem:[%s1552_s25 + $0x78] sm:$0xff]  ;;  %v363_v55 = vadd.f32 %v347_v48, %v328_v33  ;;  %v364_v56 = vadd.f32 %v348_v49, %v329_v34  ;;  %v365_v57 = vadd.f32 %v349_v50, %v330_v35 }
  0x87   :  { %v353_v58 = vld [vmem:[%s1552_s25 + $0x90] sm:$0xff]  ;;  %v354_v59 = vld [vmem:[%s1552_s25 + $0xa8] sm:$0xff]  ;;  %v355_v60 = vld [vmem:[%s1552_s25 + $0x240] sm:$0xff]  ;;  %v366_v61 = vadd.f32 %v350_v52, %v331_v36  ;;  %v367_v62 = vadd.f32 %v351_v53, %v332_v37  ;;  %v368_v63 = vadd.f32 %v352_v54, %v333_v38 }
  0x88   :  { %v356_v0 = vld [vmem:[%s1552_s25 + $0x258] sm:$0xff]  ;;  %v357_v1 = vld [vmem:[%s1552_s25 + $0x270] sm:$0xff]  ;;  %v358_v2 = vld [vmem:[%s1552_s25 + $0x288] sm:$0xff]  ;;  %v369_v3 = vadd.f32 %v353_v58, %v334_v39  ;;  %v370_v4 = vadd.f32 %v354_v59, %v335_v40  ;;  %v371_v5 = vadd.f32 %v355_v60, %v336_v41  ;;  %379 = vst.msk [vmem:[%s1552_s25] sm:$0xff] %vm31_vm0, %v363_v55 }
  0x89   :  { %380 = vst.msk [vmem:[%s1552_s25 + $0x18] sm:$0xff] %vm31_vm0, %v364_v56  ;;  %381 = vst.msk [vmem:[%s1552_s25 + $0x30] sm:$0xff] %vm31_vm0, %v365_v57  ;;  %v359_v6 = vld [vmem:[%s1552_s25 + $0x2a0] sm:$0xff]  ;;  %v360_v7 = vld [vmem:[%s1552_s25 + $0x2b8] sm:$0xff]  ;;  %v372_v9 = vadd.f32 %v356_v0, %v337_v42  ;;  %v373_v10 = vadd.f32 %v357_v1, %v338_v43  ;;  %v374_v11 = vadd.f32 %v358_v2, %v339_v44 }
  0x8a   :  { %v361_v8 = vld [vmem:[%s1552_s25 + $0x2d0] sm:$0xff]  ;;  %382 = vst.msk [vmem:[%s1552_s25 + $0x48] sm:$0xff] %vm31_vm0, %v366_v61  ;;  %383 = vst.msk [vmem:[%s1552_s25 + $0x60] sm:$0xff] %vm31_vm0, %v367_v62  ;;  %v362_v12 = vld [vmem:[%s1552_s25 + $0x2e8] sm:$0xff]  ;;  %v375_v13 = vadd.f32 %v359_v6, %v340_v45  ;;  %v376_v14 = vadd.f32 %v360_v7, %v341_v46 }
  0x8b   :  { %384 = vst.msk [vmem:[%s1552_s25 + $0x78] sm:$0xff] %vm31_vm0, %v368_v63  ;;  %v377_v15 = vadd.f32 %v361_v8, %v342_v47  ;;  %385 = vst.msk [vmem:[%s1552_s25 + $0x90] sm:$0xff] %vm31_vm0, %v369_v3  ;;  %v378_v16 = vadd.f32 %v362_v12, %v343_v51  ;;  %v416_v35 = vld [vmem:[#allocation4 + $0x278] sm:$0xff]  ;;  %v474_v1 = vld [vmem:[#allocation4 + $0x100] sm:$0xff] }
  0x8c   :  { %386 = vst.msk [vmem:[%s1552_s25 + $0xa8] sm:$0xff] %vm31_vm0, %v370_v4  ;;  %387 = vst.msk [vmem:[%s1552_s25 + $0x240] sm:$0xff] %vm31_vm0, %v371_v5  ;;  %v475_v2 = vld [vmem:[#allocation4 + $0x108] sm:$0xff]  ;;  %v476_v3 = vld [vmem:[#allocation4 + $0x110] sm:$0xff] }
  0x8d   :  { %388 = vst.msk [vmem:[%s1552_s25 + $0x258] sm:$0xff] %vm31_vm0, %v372_v9  ;;  %389 = vst.msk [vmem:[%s1552_s25 + $0x270] sm:$0xff] %vm31_vm0, %v373_v10  ;;  %v477_v4 = vld [vmem:[#allocation4 + $0x118] sm:$0xff]  ;;  %v478_v5 = vld [vmem:[#allocation4 + $0x120] sm:$0xff] }
  0x8e   :  { %390 = vst.msk [vmem:[%s1552_s25 + $0x288] sm:$0xff] %vm31_vm0, %v374_v11  ;;  %391 = vst.msk [vmem:[%s1552_s25 + $0x2a0] sm:$0xff] %vm31_vm0, %v375_v13  ;;  %v479_v6 = vld [vmem:[#allocation4 + $0x128] sm:$0xff]  ;;  %v480_v7 = vld [vmem:[#allocation4 + $0x130] sm:$0xff] }
  0x8f   :  { %392 = vst.msk [vmem:[%s1552_s25 + $0x2b8] sm:$0xff] %vm31_vm0, %v376_v14  ;;  %393 = vst.msk [vmem:[%s1552_s25 + $0x2d0] sm:$0xff] %vm31_vm0, %v377_v15  ;;  %v481_v8 = vld [vmem:[#allocation4 + $0x138] sm:$0xff]  ;;  %v482_v9 = vld [vmem:[#allocation4 + $0x280] sm:$0xff] }
  0x90   :  { %394 = vst.msk [vmem:[%s1552_s25 + $0x2e8] sm:$0xff] %vm31_vm0, %v378_v16  ;;  %v483_v10 = vld [vmem:[#allocation4 + $0x288] sm:$0xff]  ;;  %v484_v11 = vld [vmem:[#allocation4 + $0x290] sm:$0xff]  ;;  %v485_v12 = vld [vmem:[#allocation4 + $0x298] sm:$0xff] }
  0x91   :  { %v486_v13 = vld [vmem:[#allocation4 + $0x2a0] sm:$0xff]  ;;  %v487_v14 = vld [vmem:[#allocation4 + $0x2a8] sm:$0xff]  ;;  %v488_v15 = vld [vmem:[#allocation4 + $0x2b0] sm:$0xff] }
  0x97   :  { %v420_v32 = vld [vmem:[%s1611_s4] sm:$0xff]  ;;  %v421_v33 = vld [vmem:[%s1611_s4 + $0x18] sm:$0xff]  ;;  %v422_v34 = vld [vmem:[%s1611_s4 + $0x30] sm:$0xff] }
  0x98   :  { %v423_v36 = vld [vmem:[%s1611_s4 + $0x48] sm:$0xff]  ;;  %v424_v37 = vld [vmem:[%s1611_s4 + $0x60] sm:$0xff]  ;;  %v425_v38 = vld [vmem:[%s1611_s4 + $0x78] sm:$0xff]  ;;  %v436_v39 = vadd.f32 %v420_v32, %v401_v17  ;;  %v437_v40 = vadd.f32 %v421_v33, %v402_v18  ;;  %v438_v41 = vadd.f32 %v422_v34, %v403_v19 }
  0x99   :  { %v426_v42 = vld [vmem:[%s1611_s4 + $0x90] sm:$0xff]  ;;  %v427_v43 = vld [vmem:[%s1611_s4 + $0xa8] sm:$0xff]  ;;  %v428_v44 = vld [vmem:[%s1611_s4 + $0x240] sm:$0xff]  ;;  %v439_v45 = vadd.f32 %v423_v36, %v404_v20  ;;  %v440_v46 = vadd.f32 %v424_v37, %v405_v21  ;;  %v441_v47 = vadd.f32 %v425_v38, %v406_v22 }
  0x9a   :  { %v429_v48 = vld [vmem:[%s1611_s4 + $0x258] sm:$0xff]  ;;  %v430_v49 = vld [vmem:[%s1611_s4 + $0x270] sm:$0xff]  ;;  %v431_v50 = vld [vmem:[%s1611_s4 + $0x288] sm:$0xff]  ;;  %v442_v51 = vadd.f32 %v426_v42, %v407_v23  ;;  %v443_v52 = vadd.f32 %v427_v43, %v408_v24  ;;  %v444_v53 = vadd.f32 %v428_v44, %v409_v25  ;;  %452 = vst.msk [vmem:[%s1611_s4] sm:$0xff] %vm31_vm0, %v436_v39 }
  0x9b   :  { %453 = vst.msk [vmem:[%s1611_s4 + $0x18] sm:$0xff] %vm31_vm0, %v437_v40  ;;  %454 = vst.msk [vmem:[%s1611_s4 + $0x30] sm:$0xff] %vm31_vm0, %v438_v41  ;;  %v432_v54 = vld [vmem:[%s1611_s4 + $0x2a0] sm:$0xff]  ;;  %v433_v55 = vld [vmem:[%s1611_s4 + $0x2b8] sm:$0xff]  ;;  %v445_v57 = vadd.f32 %v429_v48, %v410_v26  ;;  %v446_v58 = vadd.f32 %v430_v49, %v411_v27  ;;  %v447_v59 = vadd.f32 %v431_v50, %v412_v28 }
  0x9c   :  { %v434_v56 = vld [vmem:[%s1611_s4 + $0x2d0] sm:$0xff]  ;;  %455 = vst.msk [vmem:[%s1611_s4 + $0x48] sm:$0xff] %vm31_vm0, %v439_v45  ;;  %456 = vst.msk [vmem:[%s1611_s4 + $0x60] sm:$0xff] %vm31_vm0, %v440_v46  ;;  %v435_v60 = vld [vmem:[%s1611_s4 + $0x2e8] sm:$0xff]  ;;  %v448_v61 = vadd.f32 %v432_v54, %v413_v29  ;;  %v449_v62 = vadd.f32 %v433_v55, %v414_v30 }
  0x9d   :  { %457 = vst.msk [vmem:[%s1611_s4 + $0x78] sm:$0xff] %vm31_vm0, %v441_v47  ;;  %v450_v63 = vadd.f32 %v434_v56, %v415_v31  ;;  %458 = vst.msk [vmem:[%s1611_s4 + $0x90] sm:$0xff] %vm31_vm0, %v442_v51  ;;  %v451_v0 = vadd.f32 %v435_v60, %v416_v35  ;;  %v489_v19 = vld [vmem:[#allocation4 + $0x2b8] sm:$0xff]  ;;  %v547_v49 = vld [vmem:[#allocation4 + $0x140] sm:$0xff] }
  0x9e   :  { %459 = vst.msk [vmem:[%s1611_s4 + $0xa8] sm:$0xff] %vm31_vm0, %v443_v52  ;;  %460 = vst.msk [vmem:[%s1611_s4 + $0x240] sm:$0xff] %vm31_vm0, %v444_v53  ;;  %v548_v50 = vld [vmem:[#allocation4 + $0x148] sm:$0xff]  ;;  %v549_v51 = vld [vmem:[#allocation4 + $0x150] sm:$0xff] }
  0x9f   :  { %461 = vst.msk [vmem:[%s1611_s4 + $0x258] sm:$0xff] %vm31_vm0, %v445_v57  ;;  %462 = vst.msk [vmem:[%s1611_s4 + $0x270] sm:$0xff] %vm31_vm0, %v446_v58  ;;  %v550_v52 = vld [vmem:[#allocation4 + $0x158] sm:$0xff]  ;;  %v551_v53 = vld [vmem:[#allocation4 + $0x160] sm:$0xff] }
  0xa0   :  { %463 = vst.msk [vmem:[%s1611_s4 + $0x288] sm:$0xff] %vm31_vm0, %v447_v59  ;;  %464 = vst.msk [vmem:[%s1611_s4 + $0x2a0] sm:$0xff] %vm31_vm0, %v448_v61  ;;  %v552_v54 = vld [vmem:[#allocation4 + $0x168] sm:$0xff]  ;;  %v553_v55 = vld [vmem:[#allocation4 + $0x170] sm:$0xff] }
  0xa1   :  { %465 = vst.msk [vmem:[%s1611_s4 + $0x2b8] sm:$0xff] %vm31_vm0, %v449_v62  ;;  %466 = vst.msk [vmem:[%s1611_s4 + $0x2d0] sm:$0xff] %vm31_vm0, %v450_v63  ;;  %v554_v56 = vld [vmem:[#allocation4 + $0x178] sm:$0xff]  ;;  %v555_v57 = vld [vmem:[#allocation4 + $0x2c0] sm:$0xff] }
  0xa2   :  { %467 = vst.msk [vmem:[%s1611_s4 + $0x2e8] sm:$0xff] %vm31_vm0, %v451_v0  ;;  %v556_v58 = vld [vmem:[#allocation4 + $0x2c8] sm:$0xff]  ;;  %v557_v59 = vld [vmem:[#allocation4 + $0x2d0] sm:$0xff]  ;;  %v558_v60 = vld [vmem:[#allocation4 + $0x2d8] sm:$0xff] }
  0xa3   :  { %v559_v61 = vld [vmem:[#allocation4 + $0x2e0] sm:$0xff]  ;;  %v560_v62 = vld [vmem:[#allocation4 + $0x2e8] sm:$0xff]  ;;  %v561_v63 = vld [vmem:[#allocation4 + $0x2f0] sm:$0xff] }
  0xa9   :  { %v493_v16 = vld [vmem:[%s1670_s11] sm:$0xff]  ;;  %v494_v17 = vld [vmem:[%s1670_s11 + $0x18] sm:$0xff]  ;;  %v495_v18 = vld [vmem:[%s1670_s11 + $0x30] sm:$0xff] }
  0xaa   :  { %v496_v20 = vld [vmem:[%s1670_s11 + $0x48] sm:$0xff]  ;;  %v497_v21 = vld [vmem:[%s1670_s11 + $0x60] sm:$0xff]  ;;  %v498_v22 = vld [vmem:[%s1670_s11 + $0x78] sm:$0xff]  ;;  %v509_v23 = vadd.f32 %v493_v16, %v474_v1  ;;  %v510_v24 = vadd.f32 %v494_v17, %v475_v2  ;;  %v511_v25 = vadd.f32 %v495_v18, %v476_v3 }
  0xab   :  { %v499_v26 = vld [vmem:[%s1670_s11 + $0x90] sm:$0xff]  ;;  %v500_v27 = vld [vmem:[%s1670_s11 + $0xa8] sm:$0xff]  ;;  %v501_v28 = vld [vmem:[%s1670_s11 + $0x240] sm:$0xff]  ;;  %v512_v29 = vadd.f32 %v496_v20, %v477_v4  ;;  %v513_v30 = vadd.f32 %v497_v21, %v478_v5  ;;  %v514_v31 = vadd.f32 %v498_v22, %v479_v6 }
  0xac   :  { %v502_v32 = vld [vmem:[%s1670_s11 + $0x258] sm:$0xff]  ;;  %v503_v33 = vld [vmem:[%s1670_s11 + $0x270] sm:$0xff]  ;;  %v504_v34 = vld [vmem:[%s1670_s11 + $0x288] sm:$0xff]  ;;  %v515_v35 = vadd.f32 %v499_v26, %v480_v7  ;;  %v516_v36 = vadd.f32 %v500_v27, %v481_v8  ;;  %v517_v37 = vadd.f32 %v501_v28, %v482_v9  ;;  %525 = vst.msk [vmem:[%s1670_s11] sm:$0xff] %vm31_vm0, %v509_v23 }
  0xad   :  { %526 = vst.msk [vmem:[%s1670_s11 + $0x18] sm:$0xff] %vm31_vm0, %v510_v24  ;;  %527 = vst.msk [vmem:[%s1670_s11 + $0x30] sm:$0xff] %vm31_vm0, %v511_v25  ;;  %v505_v38 = vld [vmem:[%s1670_s11 + $0x2a0] sm:$0xff]  ;;  %v506_v39 = vld [vmem:[%s1670_s11 + $0x2b8] sm:$0xff]  ;;  %v518_v41 = vadd.f32 %v502_v32, %v483_v10  ;;  %v519_v42 = vadd.f32 %v503_v33, %v484_v11  ;;  %v520_v43 = vadd.f32 %v504_v34, %v485_v12 }
  0xae   :  { %v507_v40 = vld [vmem:[%s1670_s11 + $0x2d0] sm:$0xff]  ;;  %528 = vst.msk [vmem:[%s1670_s11 + $0x48] sm:$0xff] %vm31_vm0, %v512_v29  ;;  %529 = vst.msk [vmem:[%s1670_s11 + $0x60] sm:$0xff] %vm31_vm0, %v513_v30  ;;  %v508_v44 = vld [vmem:[%s1670_s11 + $0x2e8] sm:$0xff]  ;;  %v521_v45 = vadd.f32 %v505_v38, %v486_v13  ;;  %v522_v46 = vadd.f32 %v506_v39, %v487_v14 }
  0xaf   :  { %530 = vst.msk [vmem:[%s1670_s11 + $0x78] sm:$0xff] %vm31_vm0, %v514_v31  ;;  %v523_v47 = vadd.f32 %v507_v40, %v488_v15  ;;  %531 = vst.msk [vmem:[%s1670_s11 + $0x90] sm:$0xff] %vm31_vm0, %v515_v35  ;;  %v524_v48 = vadd.f32 %v508_v44, %v489_v19  ;;  %v562_v3 = vld [vmem:[#allocation4 + $0x2f8] sm:$0xff] }
  0xb0   :  { %532 = vst.msk [vmem:[%s1670_s11 + $0xa8] sm:$0xff] %vm31_vm0, %v516_v36  ;;  %533 = vst.msk [vmem:[%s1670_s11 + $0x240] sm:$0xff] %vm31_vm0, %v517_v37 }
  0xb1   :  { %534 = vst.msk [vmem:[%s1670_s11 + $0x258] sm:$0xff] %vm31_vm0, %v518_v41  ;;  %535 = vst.msk [vmem:[%s1670_s11 + $0x270] sm:$0xff] %vm31_vm0, %v519_v42 }
  0xb2   :  { %536 = vst.msk [vmem:[%s1670_s11 + $0x288] sm:$0xff] %vm31_vm0, %v520_v43  ;;  %537 = vst.msk [vmem:[%s1670_s11 + $0x2a0] sm:$0xff] %vm31_vm0, %v521_v45 }
  0xb3   :  { %538 = vst.msk [vmem:[%s1670_s11 + $0x2b8] sm:$0xff] %vm31_vm0, %v522_v46  ;;  %539 = vst.msk [vmem:[%s1670_s11 + $0x2d0] sm:$0xff] %vm31_vm0, %v523_v47 }
  0xb4   :  { %540 = vst.msk [vmem:[%s1670_s11 + $0x2e8] sm:$0xff] %vm31_vm0, %v524_v48 }
  0xbb   :  { %v566_v0 = vld [vmem:[%s1729_s18] sm:$0xff]  ;;  %v567_v1 = vld [vmem:[%s1729_s18 + $0x18] sm:$0xff]  ;;  %v568_v2 = vld [vmem:[%s1729_s18 + $0x30] sm:$0xff] }
  0xbc   :  { %v569_v4 = vld [vmem:[%s1729_s18 + $0x48] sm:$0xff]  ;;  %v570_v5 = vld [vmem:[%s1729_s18 + $0x60] sm:$0xff]  ;;  %v571_v6 = vld [vmem:[%s1729_s18 + $0x78] sm:$0xff]  ;;  %v582_v7 = vadd.f32 %v566_v0, %v547_v49  ;;  %v583_v8 = vadd.f32 %v567_v1, %v548_v50  ;;  %v584_v9 = vadd.f32 %v568_v2, %v549_v51 }
  0xbd   :  { %v572_v10 = vld [vmem:[%s1729_s18 + $0x90] sm:$0xff]  ;;  %v573_v11 = vld [vmem:[%s1729_s18 + $0xa8] sm:$0xff]  ;;  %v574_v12 = vld [vmem:[%s1729_s18 + $0x240] sm:$0xff]  ;;  %v585_v13 = vadd.f32 %v569_v4, %v550_v52  ;;  %v586_v14 = vadd.f32 %v570_v5, %v551_v53  ;;  %v587_v15 = vadd.f32 %v571_v6, %v552_v54 }
  0xbe   :  { %v575_v16 = vld [vmem:[%s1729_s18 + $0x258] sm:$0xff]  ;;  %v576_v17 = vld [vmem:[%s1729_s18 + $0x270] sm:$0xff]  ;;  %v577_v18 = vld [vmem:[%s1729_s18 + $0x288] sm:$0xff]  ;;  %v588_v19 = vadd.f32 %v572_v10, %v553_v55  ;;  %v589_v20 = vadd.f32 %v573_v11, %v554_v56  ;;  %v590_v21 = vadd.f32 %v574_v12, %v555_v57  ;;  %598 = vst.msk [vmem:[%s1729_s18] sm:$0xff] %vm31_vm0, %v582_v7 }
  0xbf   :  { %599 = vst.msk [vmem:[%s1729_s18 + $0x18] sm:$0xff] %vm31_vm0, %v583_v8  ;;  %600 = vst.msk [vmem:[%s1729_s18 + $0x30] sm:$0xff] %vm31_vm0, %v584_v9  ;;  %v578_v22 = vld [vmem:[%s1729_s18 + $0x2a0] sm:$0xff]  ;;  %v579_v23 = vld [vmem:[%s1729_s18 + $0x2b8] sm:$0xff]  ;;  %v591_v25 = vadd.f32 %v575_v16, %v556_v58  ;;  %v592_v26 = vadd.f32 %v576_v17, %v557_v59  ;;  %v593_v27 = vadd.f32 %v577_v18, %v558_v60 }
  0xc0   :  { %v580_v24 = vld [vmem:[%s1729_s18 + $0x2d0] sm:$0xff]  ;;  %601 = vst.msk [vmem:[%s1729_s18 + $0x48] sm:$0xff] %vm31_vm0, %v585_v13  ;;  %602 = vst.msk [vmem:[%s1729_s18 + $0x60] sm:$0xff] %vm31_vm0, %v586_v14  ;;  %v581_v28 = vld [vmem:[%s1729_s18 + $0x2e8] sm:$0xff]  ;;  %v594_v29 = vadd.f32 %v578_v22, %v559_v61  ;;  %v595_v30 = vadd.f32 %v579_v23, %v560_v62 }
  0xc1   :  { %603 = vst.msk [vmem:[%s1729_s18 + $0x78] sm:$0xff] %vm31_vm0, %v587_v15  ;;  %v596_v31 = vadd.f32 %v580_v24, %v561_v63  ;;  %604 = vst.msk [vmem:[%s1729_s18 + $0x90] sm:$0xff] %vm31_vm0, %v588_v19  ;;  %v597_v32 = vadd.f32 %v581_v28, %v562_v3 }
  0xc2   :  { %605 = vst.msk [vmem:[%s1729_s18 + $0xa8] sm:$0xff] %vm31_vm0, %v589_v20  ;;  %606 = vst.msk [vmem:[%s1729_s18 + $0x240] sm:$0xff] %vm31_vm0, %v590_v21 }
  0xc3   :  { %607 = vst.msk [vmem:[%s1729_s18 + $0x258] sm:$0xff] %vm31_vm0, %v591_v25  ;;  %608 = vst.msk [vmem:[%s1729_s18 + $0x270] sm:$0xff] %vm31_vm0, %v592_v26 }
  0xc4   :  { %609 = vst.msk [vmem:[%s1729_s18 + $0x288] sm:$0xff] %vm31_vm0, %v593_v27  ;;  %610 = vst.msk [vmem:[%s1729_s18 + $0x2a0] sm:$0xff] %vm31_vm0, %v594_v29 }
  0xc5   :  { %611 = vst.msk [vmem:[%s1729_s18 + $0x2b8] sm:$0xff] %vm31_vm0, %v595_v30  ;;  %612 = vst.msk [vmem:[%s1729_s18 + $0x2d0] sm:$0xff] %vm31_vm0, %v596_v31 }
  0xc6   :  { %613 = vst.msk [vmem:[%s1729_s18 + $0x2e8] sm:$0xff] %vm31_vm0, %v597_v32 }
  0xc7   :  { %618 = vsyncpa [#allocation5], 1 }

</bundles_post_ra>
